<compile_context>
chip_gen: v5e
topology: v5e:2x2
jax: 0.10.0
libtpu: 0.0.40
codegen_flags: <defaults>
</compile_context>

<pallas_src>
import functools

import jax
import jax.numpy as jnp
from jax.experimental import pallas as pl
from jax.experimental.pallas import tpu as pltpu


def _phyloss_kernel(x_ref, res_ref, y_ref, conf_ref, stats_ref, *,
                    w_pred, w_reco, std_factor):
    """Single-block kernel.

    x_ref    : [C, N]      x_label^T        (channels on sublanes, samples on lanes)
    res_ref  : [C + 2, N]  res^T            (rows [0:C] reco pred, rows [C:C+2] phys pred)
    y_ref    : [2, N]      y_label^T
    conf_ref : [1, N]      per-sample confidence
    stats_ref: [1, 3]      [loss_final, loss_pred_mean, loss_reco_mean]
    """
    f32 = jnp.float32
    C, N = x_ref.shape

    x = x_ref[...].astype(f32)             # [C, N]
    r = res_ref[0:C, :].astype(f32)        # [C, N]  reconstruction prediction
    p = res_ref[C:C + 2, :].astype(f32)    # [2, N]  physical-param prediction
    y = y_ref[...].astype(f32)             # [2, N]

    # ---- reconstruction loss: 1 - cosine_similarity over channels (sublane reduce)
    w12 = jnp.sum(x * r, axis=0, keepdims=True)   # [1, N]
    w1 = jnp.sum(r * r, axis=0, keepdims=True)    # [1, N]
    w2 = jnp.sum(x * x, axis=0, keepdims=True)    # [1, N]
    # torch F.cosine_similarity: w12 / sqrt(clamp(w1*w2, eps^2)), eps = 1e-8
    eps2 = f32(1e-16)
    cos = w12 * jax.lax.rsqrt(jnp.maximum(w1 * w2, eps2))    # EUP rsqrt
    loss_reco = f32(1.0) - cos                               # [1, N]

    # ---- prediction loss: MSE over the 2 normalized channels
    # normalize_tensor: channel 0 unchanged, channel 1 / 10
    # (a/10 - b/10)^2 == 0.01 * (a - b)^2 -> fold the scale.
    d0 = p[0:1, :] - y[0:1, :]
    d1 = p[1:2, :] - y[1:2, :]
    loss_pred = f32(0.5) * (d0 * d0 + f32(0.01) * (d1 * d1))  # [1, N]

    # ---- single-pass batch statistics: one stacked cross-lane reduce --------
    stacked = jnp.concatenate(
        [loss_reco, loss_pred, loss_reco * loss_reco], axis=0)   # [3, N]
    sums = jnp.sum(stacked, axis=1, keepdims=True)               # [3, 1], 1 XLU pass

    inv_n = f32(1.0 / N)
    lr_mean = sums[0:1, :] * inv_n                               # [1, 1]
    lp_mean = sums[1:2, :] * inv_n                               # [1, 1]
    lr_sqsum = sums[2:3, :]                                      # [1, 1]

    loss_final = f32(w_pred) * lp_mean + f32(w_reco) * lr_mean   # [1, 1]

    # unbiased variance via E[x^2] - mean^2, clamped at 0 (rounding guard)
    var = (lr_sqsum - f32(N) * lr_mean * lr_mean) * f32(1.0 / max(N - 1, 1))
    var = jnp.maximum(var, f32(0.0))

    # ---- confidence: Gaussian around this batch's loss_reco mean/std --------
    inv_sigma = jax.lax.rsqrt(jnp.maximum(var, f32(1e-24))) * f32(1.0 / std_factor)
    z = (loss_reco - lr_mean) * inv_sigma                        # [1, N]
    conf = jnp.exp(f32(-0.5) * z * z)                            # in (0, 1]
    conf = jnp.where(loss_reco < lr_mean, f32(1.0), conf)

    conf_ref[...] = conf
    stats_ref[...] = jnp.concatenate([loss_final, lp_mean, lr_mean], axis=1)  # [1, 3]


def phy_loss(x_label, y_label, res, *,
             w_pred=0.5, w_reco=0.5, confidence_std_factor=1.0):
    """JAX/Pallas equivalent of PhyLoss.forward (loss_type='cosine')."""
    N, C = x_label.shape
    assert y_label.shape == (N, 2)
    assert res.shape == (N, C + 2)

    # Only wrapper layout work: channel axis -> sublanes (three transposes,
    # no pads, no concat).  Inputs stay in native dtype; kernel upcasts to f32.
    xT = x_label.T          # [C, N]
    rT = res.T              # [C + 2, N]
    yT = y_label.T          # [2, N]

    kernel = functools.partial(
        _phyloss_kernel,
        w_pred=float(w_pred),
        w_reco=float(w_reco),
        std_factor=float(confidence_std_factor),
    )

    # Rough single-block VMEM need: native-width inputs + f32 temporaries
    # + outputs; generous headroom, capped below v7x's 64 MiB physical VMEM.
    itemsize = jnp.dtype(res.dtype).itemsize
    lanes = max(N, 128)
    approx_bytes = (2 * C + 4) * lanes * (itemsize + 3 * 4) + 8 * lanes
    vmem_limit = int(min(max(4 * approx_bytes, 16 * 2 ** 20), 60 * 2 ** 20))

    conf, stats = pl.pallas_call(
        kernel,
        out_shape=(
            jax.ShapeDtypeStruct((1, N), jnp.float32),   # confidence row
            jax.ShapeDtypeStruct((1, 3), jnp.float32),   # scalar stats
        ),
        in_specs=[
            pl.BlockSpec(memory_space=pltpu.MemorySpace.VMEM),
            pl.BlockSpec(memory_space=pltpu.MemorySpace.VMEM),
            pl.BlockSpec(memory_space=pltpu.MemorySpace.VMEM),
        ],
        out_specs=(
            pl.BlockSpec(memory_space=pltpu.MemorySpace.VMEM),
            pl.BlockSpec(memory_space=pltpu.MemorySpace.VMEM),
        ),
        compiler_params=pltpu.CompilerParams(vmem_limit_bytes=vmem_limit),
    )(xT, rT, yT)

    loss_final = stats[0, 0]
    lp_mean = stats[0, 1]
    lr_mean = stats[0, 2]
    confidence = conf[0]
    return loss_final, confidence, {"loss_pred": lp_mean, "loss_reco": lr_mean}


if __name__ == "__main__":
    key = jax.random.PRNGKey(0)
    k1, k2, k3 = jax.random.split(key, 3)

    N, C = 16, 8                       # small shapes consistent with the module
    x_label = jax.random.normal(k1, (N, C), dtype=jnp.float32)
    y_label = jax.random.normal(k2, (N, 2), dtype=jnp.float32)
    res = jax.random.normal(k3, (N, C + 2), dtype=jnp.float32)

    fn = jax.jit(lambda a, b, c: phy_loss(
        a, b, c, w_pred=0.5, w_reco=0.5, confidence_std_factor=1.0))

    loss_final, confidence, aux = fn(x_label, y_label, res)
    jax.block_until_ready((loss_final, confidence, aux))
    print("KERNEL_OK")
</pallas_src>

<mosaic_0001>
module attributes {stable_mosaic.version = 11 : i64} {
  func.func @_phyloss_kernel(%arg0: memref<8x16xf32, #tpu.memory_space<vmem>>, %arg1: memref<10x16xf32, #tpu.memory_space<vmem>>, %arg2: memref<2x16xf32, #tpu.memory_space<vmem>>, %arg3: memref<1x16xf32, #tpu.memory_space<vmem>>, %arg4: memref<1x3xf32, #tpu.memory_space<vmem>>) attributes {dimension_semantics = [], scalar_prefetch = 0 : i64, scratch_operands = 0 : i64, tpu.core_type = #tpu.core_type<tc>} {
    %c0 = arith.constant 0 : index
    %c0_0 = arith.constant 0 : index
    %0 = vector.load %arg0[%c0, %c0_0] : memref<8x16xf32, #tpu.memory_space<vmem>>, vector<8x16xf32>
    %c0_1 = arith.constant 0 : index
    %c0_2 = arith.constant 0 : index
    %1 = vector.load %arg1[%c0_1, %c0_2] : memref<10x16xf32, #tpu.memory_space<vmem>>, vector<8x16xf32>
    %c8 = arith.constant 8 : index
    %c0_3 = arith.constant 0 : index
    %2 = vector.load %arg1[%c8, %c0_3] : memref<10x16xf32, #tpu.memory_space<vmem>>, vector<2x16xf32>
    %c0_4 = arith.constant 0 : index
    %c0_5 = arith.constant 0 : index
    %3 = vector.load %arg2[%c0_4, %c0_5] : memref<2x16xf32, #tpu.memory_space<vmem>>, vector<2x16xf32>
    %4 = arith.mulf %0, %1 : vector<8x16xf32>
    %cst = arith.constant dense<0.000000e+00> : vector<16xf32>
    %5 = vector.multi_reduction <add>, %4, %cst [0] : vector<8x16xf32> to vector<16xf32>
    %6 = vector.shape_cast %5 : vector<16xf32> to vector<1x16xf32>
    %7 = arith.mulf %1, %1 : vector<8x16xf32>
    %cst_6 = arith.constant dense<0.000000e+00> : vector<16xf32>
    %8 = vector.multi_reduction <add>, %7, %cst_6 [0] : vector<8x16xf32> to vector<16xf32>
    %9 = vector.shape_cast %8 : vector<16xf32> to vector<1x16xf32>
    %10 = arith.mulf %0, %0 : vector<8x16xf32>
    %cst_7 = arith.constant dense<0.000000e+00> : vector<16xf32>
    %11 = vector.multi_reduction <add>, %10, %cst_7 [0] : vector<8x16xf32> to vector<16xf32>
    %12 = vector.shape_cast %11 : vector<16xf32> to vector<1x16xf32>
    %13 = arith.mulf %9, %12 : vector<1x16xf32>
    %cst_8 = arith.constant 1.000000e-16 : f32
    %14 = vector.broadcast %cst_8 : f32 to vector<1x16xf32>
    %15 = arith.maximumf %13, %14 : vector<1x16xf32>
    %16 = math.rsqrt %15 : vector<1x16xf32>
    %17 = arith.mulf %6, %16 : vector<1x16xf32>
    %cst_9 = arith.constant 1.000000e+00 : f32
    %18 = vector.broadcast %cst_9 : f32 to vector<1x16xf32>
    %19 = arith.subf %18, %17 : vector<1x16xf32>
    %20 = vector.extract_strided_slice %2 {offsets = [0, 0], sizes = [1, 16], strides = [1, 1]} : vector<2x16xf32> to vector<1x16xf32>
    %21 = vector.extract_strided_slice %3 {offsets = [0, 0], sizes = [1, 16], strides = [1, 1]} : vector<2x16xf32> to vector<1x16xf32>
    %22 = arith.subf %20, %21 : vector<1x16xf32>
    %23 = vector.extract_strided_slice %2 {offsets = [1, 0], sizes = [1, 16], strides = [1, 1]} : vector<2x16xf32> to vector<1x16xf32>
    %24 = vector.extract_strided_slice %3 {offsets = [1, 0], sizes = [1, 16], strides = [1, 1]} : vector<2x16xf32> to vector<1x16xf32>
    %25 = arith.subf %23, %24 : vector<1x16xf32>
    %26 = arith.mulf %22, %22 : vector<1x16xf32>
    %27 = arith.mulf %25, %25 : vector<1x16xf32>
    %cst_10 = arith.constant 0.00999999977 : f32
    %28 = vector.broadcast %cst_10 : f32 to vector<1x16xf32>
    %29 = arith.mulf %28, %27 : vector<1x16xf32>
    %30 = arith.addf %26, %29 : vector<1x16xf32>
    %cst_11 = arith.constant 5.000000e-01 : f32
    %31 = vector.broadcast %cst_11 : f32 to vector<1x16xf32>
    %32 = arith.mulf %31, %30 : vector<1x16xf32>
    %33 = arith.mulf %19, %19 : vector<1x16xf32>
    %34 = tpu.concatenate %19, %32, %33 in 0 : vector<1x16xf32>, vector<1x16xf32>, vector<1x16xf32> -> vector<3x16xf32>
    %cst_12 = arith.constant dense<0.000000e+00> : vector<3xf32>
    %35 = vector.multi_reduction <add>, %34, %cst_12 [1] : vector<3x16xf32> to vector<3xf32>
    %36 = vector.shape_cast %35 : vector<3xf32> to vector<3x1xf32>
    %37 = vector.extract_strided_slice %36 {offsets = [0, 0], sizes = [1, 1], strides = [1, 1]} : vector<3x1xf32> to vector<1x1xf32>
    %cst_13 = arith.constant 6.250000e-02 : f32
    %38 = vector.broadcast %cst_13 : f32 to vector<1x1xf32>
    %39 = arith.mulf %37, %38 : vector<1x1xf32>
    %40 = vector.extract_strided_slice %36 {offsets = [1, 0], sizes = [1, 1], strides = [1, 1]} : vector<3x1xf32> to vector<1x1xf32>
    %cst_14 = arith.constant 6.250000e-02 : f32
    %41 = vector.broadcast %cst_14 : f32 to vector<1x1xf32>
    %42 = arith.mulf %40, %41 : vector<1x1xf32>
    %43 = vector.extract_strided_slice %36 {offsets = [2, 0], sizes = [1, 1], strides = [1, 1]} : vector<3x1xf32> to vector<1x1xf32>
    %cst_15 = arith.constant 5.000000e-01 : f32
    %44 = vector.broadcast %cst_15 : f32 to vector<1x1xf32>
    %45 = arith.mulf %44, %42 : vector<1x1xf32>
    %cst_16 = arith.constant 5.000000e-01 : f32
    %46 = vector.broadcast %cst_16 : f32 to vector<1x1xf32>
    %47 = arith.mulf %46, %39 : vector<1x1xf32>
    %48 = arith.addf %45, %47 : vector<1x1xf32>
    %cst_17 = arith.constant 1.600000e+01 : f32
    %49 = vector.broadcast %cst_17 : f32 to vector<1x1xf32>
    %50 = arith.mulf %49, %39 : vector<1x1xf32>
    %51 = arith.mulf %50, %39 : vector<1x1xf32>
    %52 = arith.subf %43, %51 : vector<1x1xf32>
    %cst_18 = arith.constant 0.0666666701 : f32
    %53 = vector.broadcast %cst_18 : f32 to vector<1x1xf32>
    %54 = arith.mulf %52, %53 : vector<1x1xf32>
    %cst_19 = arith.constant 0.000000e+00 : f32
    %55 = vector.broadcast %cst_19 : f32 to vector<1x1xf32>
    %56 = arith.maximumf %54, %55 : vector<1x1xf32>
    %cst_20 = arith.constant 1.000000e-24 : f32
    %57 = vector.broadcast %cst_20 : f32 to vector<1x1xf32>
    %58 = arith.maximumf %56, %57 : vector<1x1xf32>
    %59 = math.rsqrt %58 : vector<1x1xf32>
    %cst_21 = arith.constant 1.000000e+00 : f32
    %60 = vector.broadcast %cst_21 : f32 to vector<1x1xf32>
    %61 = arith.mulf %59, %60 : vector<1x1xf32>
    %62 = vector.broadcast %39 : vector<1x1xf32> to vector<1x16xf32>
    %63 = arith.subf %19, %62 : vector<1x16xf32>
    %64 = vector.broadcast %61 : vector<1x1xf32> to vector<1x16xf32>
    %65 = arith.mulf %63, %64 : vector<1x16xf32>
    %cst_22 = arith.constant -5.000000e-01 : f32
    %66 = vector.broadcast %cst_22 : f32 to vector<1x16xf32>
    %67 = arith.mulf %66, %65 : vector<1x16xf32>
    %68 = arith.mulf %67, %65 : vector<1x16xf32>
    %69 = math.exp %68 : vector<1x16xf32>
    %70 = vector.broadcast %39 : vector<1x1xf32> to vector<1x16xf32>
    %71 = arith.cmpf olt, %19, %70 : vector<1x16xf32>
    %cst_23 = arith.constant 1.000000e+00 : f32
    %72 = vector.broadcast %cst_23 : f32 to vector<1x16xf32>
    %73 = arith.select %71, %72, %69 : vector<1x16xi1>, vector<1x16xf32>
    %c0_24 = arith.constant 0 : index
    %c0_25 = arith.constant 0 : index
    %74 = vector.load %arg3[%c0_24, %c0_25] : memref<1x16xf32, #tpu.memory_space<vmem>>, vector<1x16xf32>
    tpu.vector_store %arg3[%c0_24, %c0_25], %73 {strides = array<i32>} : memref<1x16xf32, #tpu.memory_space<vmem>>, vector<1x16xf32>,
    %75 = tpu.concatenate %48, %42, %39 in 1 : vector<1x1xf32>, vector<1x1xf32>, vector<1x1xf32> -> vector<1x3xf32>
    %c0_26 = arith.constant 0 : index
    %c0_27 = arith.constant 0 : index
    %76 = vector.load %arg4[%c0_26, %c0_27] : memref<1x3xf32, #tpu.memory_space<vmem>>, vector<1x3xf32>
    tpu.vector_store %arg4[%c0_26, %c0_27], %75 {strides = array<i32>} : memref<1x3xf32, #tpu.memory_space<vmem>>, vector<1x3xf32>,
    return
  }
}

</mosaic_0001>

<bundles_post_ra>
// kernel: _lambda_.1
= control target key start
LH: loop header
LB: loop body
LE: loop exit
PB: predicated region body
PF: predicated region fallthrough
CT: control target
= control target key end

     0   :  { %vm22_vm0 = vcmask 130048   ;;  %s233_s0 = inlined_call_operand.vmem [shape: f32[8,16], index: 0, kind: input, shape index: {}]   ;;  %s234_s1 = inlined_call_operand.vmem [shape: f32[10,16], index: 1, kind: input, shape index: {}]   ;;  %s235_s2 = inlined_call_operand.vmem [shape: f32[2,16], index: 2, kind: input, shape index: {}]   ;;  %s236_s3 = inlined_call_operand.hbm [shape: f32[1,16], index: 3, kind: output, shape index: {0}]   ;;  %s237_s4 = inlined_call_operand.vmem [shape: f32[1,3], index: 4, kind: output, shape index: {1}]  }
   0x1   :  { %v17_v0 = vld [vmem:[%s233_s0] sm:$0xff] }
   0x2   :  { %v18_v1 = vld [vmem:[%s234_s1] sm:$0xff]  ;;  %v38_v3 = vmul.f32 %v17_v0, %v17_v0 }
   0x3   :  { %v30_v2 = vmul.f32 %v18_v1, %v18_v1 }
   0x4   :  { %10 = vsyncpa [#allocation3], 0  ;;  %v39_v5 = vsel %vm22_vm0, %v38_v3, 0.0  ;;  %v21_v10 = vmul.f32 %v18_v1, %v17_v0  ;;  %v19_v15 = vld [vmem:[%s234_s1 + $0x8] sm:$0x3]  ;;  %vm72_vm4 = vcmask 1040384  }
   0x5   :  { %v31_v4 = vsel %vm22_vm0, %v30_v2, 0.0  ;;  %v40_v7 = vrot.slane %v39_v5, 4  ;;  %v20_v16 = vld [vmem:[%s235_s2] sm:$0x3]  ;;  %vm74_vm5 = vcmask 1041408   ;;  %vm76_vm6 = vcmask 124928  }
   0x6   :  { %v32_v6 = vrot.slane %v31_v4, 4  ;;  %v23_v17 = vsel %vm22_vm0, %v21_v10, 0.0  ;;  %v60_v23 = vsub.f32 %v19_v15, %v20_v16  ;;  %v185_v50 = vmov 0   ;;  %s137_s25 = sshll.u32 %s236_s3, 4  ;;  %s138_s25 = int_to_ptr.hbm [resolvable:$true] %s137_s25 }
   0x7   :  { %v41_v9 = vadd.f32 %v40_v7, %v39_v5  ;;  %v24_v20 = vrot.slane %v23_v17, 4  ;;  %152 = vset.pattern.permute.xlu0 %v185_v50  ;;  %vm124_vm7 = vcmask 7168   ;;  %vm126_vm8 = vcmask 15360  }
   0x8   :  { %v33_v8 = vadd.f32 %v32_v6, %v31_v4  ;;  %v61_v27 = vmul.f32 %v60_v23, %v60_v23  ;;  %vm128_vm9 = vcmask 17409   ;;  %vm119_vm13 = vcmask 122880  }
   0x9   :  { %v42_v12 = vrot.slane %v41_v9, 2  ;;  %v25_v25 = vadd.f32 %v24_v20, %v23_v17 }
   0xa   :  { %v34_v11 = vrot.slane %v33_v8, 2  ;;  %v62_v29 = vmul.f32 0.01, %v61_v27 }
   0xb   :  { %v43_v14 = vadd.f32 %v42_v12, %v41_v9  ;;  %v26_v28 = vrot.slane %v25_v25, 2 }
   0xc   :  { %v35_v13 = vadd.f32 %v34_v11, %v33_v8  ;;  %v64_v32 = vrot.slane %v62_v29, 1 }
   0xd   :  { %v44_v19 = vrot.slane %v43_v14, 1  ;;  %v27_v31 = vadd.f32 %v26_v28, %v25_v25 }
   0xe   :  { %v36_v18 = vrot.slane %v35_v13, 1  ;;  %v66_v36 = vadd.f32 %v64_v32, %v61_v27 }
   0xf   :  { %v45_v22 = vadd.f32 %v44_v19, %v43_v14  ;;  %v28_v35 = vrot.slane %v27_v31, 1 }
  0x10   :  { %v37_v21 = vadd.f32 %v36_v18, %v35_v13  ;;  %v67_v40 = vmul.f32 0.5, %v66_v36 }
  0x11   :  { %v29_v39 = vadd.f32 %v28_v35, %v27_v31 }
  0x12   :  { %v46_v24 = vmul.f32 %v45_v22, %v37_v21  ;;  %v70_v44 = vrot.slane %v67_v40, 7 }
  0x14   :  { %v47_v26 = vmax.f32 %v46_v24, 1e-16 }
  0x16   :  { %153 = vrsqrt.f32 %v47_v26  ;;  %vm54_vm1 = vweird.f32 %v47_v26 }
  0x1c   :  { %v154_v30 = vpop.eup %153 }
  0x1d   :  { %v49_v33 = vmul.f32 %v154_v30, %v47_v26  ;;  %vm55_vm2 = vweird.f32 %v154_v30 }
  0x1e   :  { %vm56_vm3 = vmor %vm54_vm1, %vm55_vm2 }
  0x1f   :  { %v50_v34 = vmul.f32 %v154_v30, %v49_v33 }
  0x21   :  { %v51_v37 = vmul.f32 0.5, %v50_v34 }
  0x23   :  { %v52_v38 = vsub.f32 1.5, %v51_v37 }
  0x25   :  { %v53_v41 = vmul.f32 %v154_v30, %v52_v38 }
  0x27   :  { %v57_v42 = vsel %vm56_vm3, %v154_v30, %v53_v41 }
  0x28   :  { %v58_v43 = vmul.f32 %v57_v42, %v29_v39 }
  0x2a   :  { %v59_v45 = vsub.f32 1.0, %v58_v43 }
  0x2c   :  { %v68_v46 = vmul.f32 %v59_v45, %v59_v45  ;;  %v73_v47 = vsel %vm72_vm4, %v59_v45, %v70_v44 }
  0x2e   :  { %v75_v48 = vsel %vm74_vm5, %v73_v47, %v68_v46 }
  0x2f   :  { %v77_v49 = vsel %vm76_vm6, %v75_v48, 0.0 }
  0x30   :  { %78 = vadd.xlane.f32.xlu0 %v77_v49 }
  0xa3   :  { %v79_v51 = vpop.xlane.xlu0 %78 }
  0xa4   :  { %v80_v52 = vmul.f32 0.0625, %v79_v51 }
  0xa6   :  { %v81_v53 = vmul.f32 0.5, %v80_v52  ;;  %v86_v54 = vmul.f32 16.0, %v80_v52  ;;  %v122_v59 = vrot.slane %v80_v52, 7  ;;  %v105_v10 = vsub.f32 %v59_v45, %v80_v52 }
  0xa7   :  { %vm117_vm14 = vcmp.lt.f32.partialorder %v59_v45, %v80_v52 }
  0xa8   :  { %v83_v55 = vrot.slane %v81_v53, 7  ;;  %v87_v56 = vmul.f32 %v86_v54, %v80_v52 }
  0xaa   :  { %v85_v57 = vadd.f32 %v83_v55, %v81_v53  ;;  %v89_v58 = vrot.slane %v87_v56, 6 }
  0xac   :  { %v91_v60 = vsub.f32 %v79_v51, %v89_v58  ;;  %v125_v61 = vsel %vm124_vm7, %v85_v57, %v80_v52 }
  0xad   :  { %v127_v62 = vsel %vm126_vm8, %v125_v61, %v122_v59 }
  0xae   :  { %v92_v63 = vmul.f32 0.06666667, %v91_v60  ;;  %129 = vst.msk [vmem:[%s237_s4 - $0x1] sm:$0x2] %vm128_vm9, %v127_v62  ;;  %s186_s4 = smov [#allocation2]  }
  0xaf   :  { %s135_s22 = sshll.u32 %s186_s4, 4  ;;  %s136_s22 = int_to_ptr.vmem [resolvable:$true] %s135_s22 }
  0xb0   :  { %v93_v0 = vmax.f32 %v92_v63, 0.0 }
  0xb2   :  { %v94_v1 = vmax.f32 %v93_v0, 1e-24 }
  0xb4   :  { %155 = vrsqrt.f32 %v94_v1  ;;  %vm101_vm11 = vweird.f32 %v94_v1 }
  0xba   :  { %v156_v2 = vpop.eup %155 }
  0xbb   :  { %v96_v3 = vmul.f32 %v156_v2, %v94_v1  ;;  %vm102_vm10 = vweird.f32 %v156_v2 }
  0xbc   :  { %vm103_vm12 = vmor %vm101_vm11, %vm102_vm10 }
  0xbd   :  { %v97_v4 = vmul.f32 %v156_v2, %v96_v3 }
  0xbf   :  { %v98_v5 = vmul.f32 0.5, %v97_v4 }
  0xc1   :  { %v99_v6 = vsub.f32 1.5, %v98_v5 }
  0xc3   :  { %v100_v7 = vmul.f32 %v156_v2, %v99_v6 }
  0xc5   :  { %v104_v8 = vsel %vm103_vm12, %v156_v2, %v100_v7 }
  0xc6   :  { %108 = vperm.xlu0 %152, %v104_v8  }
 0x138   :  { %v109_v9 = vpop.permute.xlu0 %108 }
 0x139   :  { %v110_v11 = vrot.slane %v109_v9, 2 }
 0x13b   :  { %v112_v12 = vmul.f32 %v110_v11, %v105_v10 }
 0x13d   :  { %v113_v13 = vmul.f32 -0.5, %v112_v12 }
 0x13f   :  { %v114_v14 = vmul.f32 %v113_v13, %v112_v12 }
 0x141   :  { %v115_v15 = vmul.f32 1.442695, %v114_v14 }
 0x143   :  { %157 = vpow2.f32 %v115_v15 }
 0x149   :  { %v158_v16 = vpop.eup %157 }
 0x14a   :  { %v118_v17 = vsel %vm117_vm14, 1.0, %v158_v16 }
 0x14b   :  { %120 = vst.msk [vmem:[#allocation2] sm:$0x1] %vm119_vm13, %v118_v17 }
 0x14c   :  { %140 = dma.vmem_to_hbm [thread:$0]  %s136_s22, 16, %s138_s25, [#allocation3]  }
 0x14d   :  { %183 = dma.done.wait [#allocation3], 16  }
 0x14e   :  { %184 = vsyncadd [#allocation3], 4294967280 }
 0x14f   :  { %149 = vsyncpa [#allocation3], 1 }

</bundles_post_ra>
